<compile_context>
chip_gen: v5e
topology: v5e:2x2
jax: 0.10.0
libtpu: 0.0.40
codegen_flags: <defaults>
</compile_context>

<pallas_src>
import functools
import math

import jax
import jax.numpy as jnp
from jax.experimental import pallas as pl
from jax.experimental.pallas import tpu as pltpu


# ----------------------------------------------------------------------------
# pe buffer construction (plain JAX glue; mirrors the torch __init__ exactly)
# ----------------------------------------------------------------------------
def make_pe(d_model: int, max_height: int = 32, max_width: int = 32) -> jax.Array:
    pe = jnp.zeros((d_model, max_height, max_width), jnp.float32)
    dm = d_model // 2
    pos_h = jnp.arange(max_height, dtype=jnp.float32)[:, None]      # (H, 1)
    pos_w = jnp.arange(max_width, dtype=jnp.float32)[:, None]       # (W, 1)
    div_term = jnp.exp(
        jnp.arange(0, dm, 2, dtype=jnp.float32) * (-math.log(10000.0) / dm))
    L = div_term.shape[0]

    sin_w = jnp.sin(pos_w * div_term).T                              # (L, W)
    cos_w = jnp.cos(pos_w * div_term).T                              # (L, W)
    sin_h = jnp.sin(pos_h * div_term).T                              # (L, H)
    cos_h = jnp.cos(pos_h * div_term).T                              # (L, H)

    pe = pe.at[0:dm:2, :, :].set(
        jnp.broadcast_to(sin_w[:, None, :], (L, max_height, max_width)))
    pe = pe.at[1:dm:2, :, :].set(
        jnp.broadcast_to(cos_w[:, None, :], (L, max_height, max_width)))
    pe = pe.at[dm::2, :, :].set(
        jnp.broadcast_to(sin_h[:, :, None], (L, max_height, max_width)))
    pe = pe.at[dm + 1::2, :, :].set(
        jnp.broadcast_to(cos_h[:, :, None], (L, max_height, max_width)))
    return pe


def flatten_pe(pe: jax.Array, height: int, width: int) -> jax.Array:
    """pe[:, :H, :W] reshaped to the (C, H*W) layout used by the kernel.
    Hoist this out of the per-step call so the slice-copy happens once."""
    return pe[:, :height, :width].reshape(pe.shape[0], height * width)


# ----------------------------------------------------------------------------
# Tiling helpers with honest (8, 128)-padded VMEM accounting
# ----------------------------------------------------------------------------
def _round_up(x: int, m: int) -> int:
    return -(-x // m) * m


def _vmem_footprint_bytes(row_tile: int, lane_tile: int, C: int, itemsize: int) -> int:
    """Double-buffered pipeline footprint: x block + out block + pe block,
    each padded to the f32 (8, 128) tile."""
    x_blk = _round_up(row_tile, 8) * _round_up(lane_tile, 128) * itemsize
    pe_blk = _round_up(C, 8) * _round_up(lane_tile, 128) * itemsize
    return 2 * (2 * x_blk + pe_blk)


def _choose_tiles(n_batch: int, C: int, lanes: int, itemsize: int, *,
                  target_x_bytes: int = 2 << 20, min_steps: int = 4,
                  min_x_bytes: int = 512 << 10):
    """Pick (batches_per_block, lane_tile) for x viewed as (n_batch*C, lanes).

    Row blocks are whole batches (batches_per_block * C rows): either the full
    row dim or a multiple of 8 rows, so f32 sublanes stay packed and a single
    (C, lane_tile) pe block serves every row block.  Lane tiles are either the
    full lane dim or a multiple of 128 (lane-dense, unmasked stores).
    """
    pad_r = lambda r: _round_up(r, 8)
    pad_l = lambda t: _round_up(t, 128)
    quantum = 8 // math.gcd(C, 8)            # smallest b with (b * C) % 8 == 0

    def x_bytes(b, t):
        return pad_r(b * C) * pad_l(t) * itemsize

    def steps(b, t):
        return pl.cdiv(n_batch, b) * pl.cdiv(lanes, t)

    def shrink_l(t):                          # next smaller 128-multiple, or None
        nt = max(128, (pad_l(t) // 2) // 128 * 128)
        return nt if nt < pad_l(t) else None

    def shrink_b(b):                          # next smaller legal batch count
        nb = max(quantum, (b // 2) // quantum * quantum)
        return nb if nb < b else None

    # cap the per-batch unrolled loop used when C % 8 != 0 (toy d_model sizes)
    b_blk = n_batch if (C % 8 == 0 or n_batch <= 8) else 8
    lane_tile = lanes

    # 1) per-block byte budget: shrink lanes first (keeps rows fully packed)
    while x_bytes(b_blk, lane_tile) > target_x_bytes:
        nt = shrink_l(lane_tile)
        if nt is None:
            break
        lane_tile = nt
    while x_bytes(b_blk, lane_tile) > target_x_bytes:
        nb = shrink_b(b_blk)
        if nb is None:
            break
        b_blk = nb

    # 2) give the grid a few steps (v7x megacore + DMA pipelining), but never
    #    shrink blocks so small that the ~0.35us/step overhead dominates
    while steps(b_blk, lane_tile) < min_steps:
        nt = shrink_l(lane_tile)
        if nt is None or x_bytes(b_blk, nt) < min_x_bytes:
            break
        lane_tile = nt
    while steps(b_blk, lane_tile) < min_steps:
        nb = shrink_b(b_blk)
        if nb is None or x_bytes(nb, lane_tile) < min_x_bytes:
            break
        b_blk = nb

    return b_blk, lane_tile


# ----------------------------------------------------------------------------
# In-kernel helpers
# ----------------------------------------------------------------------------
_LOWBIAS_M1 = 0x7FEB352D
_LOWBIAS_M2 = 0x846CA68B


def _hash_u32(x):
    """lowbias32 integer mixer: pure 32-bit VPU xor/shift/mul ops (no TPU PRNG,
    so it lowers both on-chip and in interpret mode)."""
    x = x ^ (x >> 16)
    x = x * jnp.uint32(_LOWBIAS_M1)
    x = x ^ (x >> 15)
    x = x * jnp.uint32(_LOWBIAS_M2)
    x = x ^ (x >> 16)
    return x


def _block_add_pe(x_ref, pe_ref, batches_per_block):
    """Yield (row_offset, x_slab + pe) pairs covering the whole x block.

    pe_ref holds one batch worth of rows (C, lane_tile); the x block stacks
    `batches_per_block` batches along the sublane axis.
    """
    pe = pe_ref[...]
    C, T = pe.shape
    if batches_per_block == 1:
        yield 0, x_ref[...] + pe
    elif C % 8 == 0:
        # leading-dim split/merge is layout-free when C is a sublane multiple
        x = x_ref[...]
        yield 0, (x.reshape(batches_per_block, C, T) + pe[None]).reshape(x.shape)
    else:
        # toy-sized C: small unrolled per-batch loop (batches_per_block <= 8)
        for b in range(batches_per_block):
            yield b * C, x_ref[pl.ds(b * C, C), :] + pe


# ----------------------------------------------------------------------------
# Pallas kernels
# ----------------------------------------------------------------------------
def _pe_add_kernel(x_ref, pe_ref, o_ref, *, batches_per_block):
    for r0, y in _block_add_pe(x_ref, pe_ref, batches_per_block):
        o_ref[pl.ds(r0, y.shape[0]), :] = y


def _pe_add_dropout_kernel(seed_ref, x_ref, pe_ref, o_ref, *,
                           batches_per_block, threshold, inv_keep,
                           row_tile, lane_tile, lanes_total):
    # Counter-based inverted dropout: bits = hash(global element id (+) seed),
    # keep iff bits >= threshold  (P(keep) = 1 - p).  Ids are global over the
    # (B*C, H*W) view, so the mask is independent of the tiling.
    seed_off = seed_ref[0] * jnp.int32(1640531527)          # odd mixer; wraps
    row0 = pl.program_id(0) * row_tile
    col0 = pl.program_id(1) * lane_tile
    for r0, y in _block_add_pe(x_ref, pe_ref, batches_per_block):
        shp = y.shape
        rows = jax.lax.broadcasted_iota(jnp.int32, shp, 0) + (row0 + r0)
        cols = jax.lax.broadcasted_iota(jnp.int32, shp, 1) + col0
        gid = rows * jnp.int32(lanes_total) + cols + seed_off   # int32, wraps
        bits = _hash_u32(gid.astype(jnp.uint32))
        keep = bits >= jnp.uint32(threshold)
        o_ref[pl.ds(r0, shp[0]), :] = jnp.where(
            keep, y * inv_keep, 0.0).astype(o_ref.dtype)


# ----------------------------------------------------------------------------
# Wrapper
# ----------------------------------------------------------------------------
def positional_encoding_2d(x, pe, *, dropout_p: float = 0.1,
                           training: bool = False, seed: int = 0,
                           target_block_bytes: int = 2 << 20,
                           donate_x: bool = False):
    """Forward of PositionalEncoding2d: x + pe[:, :H, :W], then dropout.

    x  : (B, C, H, W) float32
    pe : the full (C, max_h, max_w) buffer, or a pre-flattened (C, H*W) view
         from flatten_pe() (preferred: hoists the slice out of the step).
    target_block_bytes : useful bytes per x block.  2 MiB keeps the
         double-buffered footprint ~<= 10 MiB (safe for v5e's 16 MiB default
         scoped VMEM); bump to 4 MiB on v7x to shave per-step overhead.
    donate_x : alias x with the output (input_output_aliases) when x is dead
         after the call (e.g. inside a training step); off by default so
         callers can still read x.
    """
    assert 0.0 <= dropout_p < 1.0, "dropout_p must be in [0, 1)"
    B, C, H, W = x.shape
    lanes = H * W
    rows = B * C

    pe2 = pe[:, :H, :W].reshape(C, lanes) if pe.ndim == 3 else pe
    assert pe2.shape == (C, lanes), "pe must be (C, max_h, max_w) or (C, H*W)"

    x2 = x.reshape(rows, lanes)                 # free view: NCHW is contiguous

    b_blk, lane_tile = _choose_tiles(B, C, lanes, x.dtype.itemsize,
                                     target_x_bytes=target_block_bytes)
    row_tile = b_blk * C
    grid = (pl.cdiv(B, b_blk), pl.cdiv(lanes, lane_tile))

    vmem_needed = _vmem_footprint_bytes(row_tile, lane_tile, C, x.dtype.itemsize)
    cparams = pltpu.CompilerParams(
        dimension_semantics=("parallel", "parallel"),
        vmem_limit_bytes=int(min(max(2 * vmem_needed, 16 << 20), 100 << 20)))

    out_shape = jax.ShapeDtypeStruct((rows, lanes), x.dtype)

    if (not training) or dropout_p == 0.0:
        # Eval mode: dropout is identity (matches nn.Dropout in eval).
        out2 = pl.pallas_call(
            functools.partial(_pe_add_kernel, batches_per_block=b_blk),
            out_shape=out_shape,
            grid_spec=pltpu.PrefetchScalarGridSpec(
                num_scalar_prefetch=0,
                grid=grid,
                in_specs=[pl.BlockSpec((row_tile, lane_tile), lambda i, j: (i, j)),
                          pl.BlockSpec((C, lane_tile), lambda i, j: (0, j))],
                out_specs=pl.BlockSpec((row_tile, lane_tile), lambda i, j: (i, j)),
            ),
            compiler_params=cparams,
            input_output_aliases=({0: 0} if donate_x else {}),
        )(x2, pe2)
        return out2.reshape(B, C, H, W)

    # Training mode: scalar-prefetched seed, in-kernel inverted dropout.
    threshold = min(max(int(round(dropout_p * 4294967296.0)), 1), 4294967295)
    inv_keep = 1.0 / (1.0 - dropout_p)
    seed_arr = jnp.asarray([seed], dtype=jnp.int32)
    kernel = functools.partial(
        _pe_add_dropout_kernel,
        batches_per_block=b_blk, threshold=threshold, inv_keep=inv_keep,
        row_tile=row_tile, lane_tile=lane_tile, lanes_total=lanes)
    out2 = pl.pallas_call(
        kernel,
        out_shape=out_shape,
        grid_spec=pltpu.PrefetchScalarGridSpec(
            num_scalar_prefetch=1,
            grid=grid,
            in_specs=[pl.BlockSpec((row_tile, lane_tile), lambda i, j, s: (i, j)),
                      pl.BlockSpec((C, lane_tile), lambda i, j, s: (0, j))],
            out_specs=pl.BlockSpec((row_tile, lane_tile), lambda i, j, s: (i, j)),
        ),
        compiler_params=cparams,
        input_output_aliases=({1: 0} if donate_x else {}),
    )(seed_arr, x2, pe2)
    return out2.reshape(B, C, H, W)


# ----------------------------------------------------------------------------
# Main
# ----------------------------------------------------------------------------
if __name__ == "__main__":
    B, C, H, W = 2, 4, 16, 16
    max_h = max_w = 32

    key = jax.random.PRNGKey(0)
    x = jax.random.normal(key, (B, C, H, W), dtype=jnp.float32)

    pe = make_pe(C, max_h, max_w)
    pe_flat = flatten_pe(pe, H, W)            # hoisted once, reused every call

    # ---- eval path (deterministic): x + pe[:, :H, :W] ----
    out = positional_encoding_2d(x, pe_flat, dropout_p=0.1, training=False)
    out = jax.block_until_ready(out)

    ref = x + pe[:, :H, :W][None, ...]
    assert out.shape == (B, C, H, W)
    assert out.dtype == jnp.float32
    assert jnp.allclose(out, ref, atol=1e-6, rtol=1e-6), "eval mismatch vs reference"

    # ---- training path: every element is either 0 or (x+pe)/(1-p) ----
    p = 0.1
    out_tr = positional_encoding_2d(x, pe_flat, dropout_p=p, training=True, seed=1234)
    out_tr = jax.block_until_ready(out_tr)
    scaled = ref * (1.0 / (1.0 - p))
    ok = (out_tr == 0.0) | jnp.isclose(out_tr, scaled, atol=1e-5, rtol=1e-5)
    assert out_tr.shape == (B, C, H, W)
    assert bool(jnp.all(ok)), "training-mode dropout output inconsistent"

    print("KERNEL_OK")
</pallas_src>

<mosaic_0001>
module attributes {stable_mosaic.version = 11 : i64} {
  func.func @_pe_add_kernel(%arg0: i32, %arg1: i32, %arg2: memref<8x256xf32, #tpu.memory_space<vmem>>, %arg3: memref<4x256xf32, #tpu.memory_space<vmem>>, %arg4: memref<8x256xf32, #tpu.memory_space<vmem>>) attributes {dimension_semantics = [#tpu.dimension_semantics<parallel>, #tpu.dimension_semantics<parallel>], iteration_bounds = array<i64: 1, 1>, scalar_prefetch = 0 : i64, scratch_operands = 0 : i64, tpu.core_type = #tpu.core_type<tc>, window_params = [{transform_indices = @transform_0, window_bounds = array<i64: 8, 256>}, {transform_indices = @transform_1, window_bounds = array<i64: 4, 256>}, {transform_indices = @transform_2, window_bounds = array<i64: 8, 256>}]} {
    %c0 = arith.constant 0 : index
    %c0_0 = arith.constant 0 : index
    %0 = vector.load %arg3[%c0, %c0_0] : memref<4x256xf32, #tpu.memory_space<vmem>>, vector<4x256xf32>
    %c0_1 = arith.constant 0 : index
    %c0_2 = arith.constant 0 : index
    %1 = vector.load %arg2[%c0_1, %c0_2] : memref<8x256xf32, #tpu.memory_space<vmem>>, vector<4x256xf32>
    %2 = arith.addf %1, %0 : vector<4x256xf32>
    %c0_3 = arith.constant 0 : index
    %c0_4 = arith.constant 0 : index
    %3 = vector.load %arg4[%c0_3, %c0_4] : memref<8x256xf32, #tpu.memory_space<vmem>>, vector<4x256xf32>
    tpu.vector_store %arg4[%c0_3, %c0_4], %2 {strides = array<i32>} : memref<8x256xf32, #tpu.memory_space<vmem>>, vector<4x256xf32>,
    %c4 = arith.constant 4 : index
    %c0_5 = arith.constant 0 : index
    %4 = vector.load %arg2[%c4, %c0_5] : memref<8x256xf32, #tpu.memory_space<vmem>>, vector<4x256xf32>
    %5 = arith.addf %4, %0 : vector<4x256xf32>
    %c4_6 = arith.constant 4 : index
    %c0_7 = arith.constant 0 : index
    %6 = vector.load %arg4[%c4_6, %c0_7] : memref<8x256xf32, #tpu.memory_space<vmem>>, vector<4x256xf32>
    tpu.vector_store %arg4[%c4_6, %c0_7], %5 {strides = array<i32>} : memref<8x256xf32, #tpu.memory_space<vmem>>, vector<4x256xf32>,
    return
  }
  func.func @transform_0(%arg0: i32, %arg1: i32) -> (i32, i32) {
    %c0_i32 = arith.constant 0 : i32
    return %arg0, %arg1 : i32, i32
  }
  func.func @transform_1(%arg0: i32, %arg1: i32) -> (i32, i32) {
    %c0_i32 = arith.constant 0 : i32
    %c0_i32_0 = arith.constant 0 : i32
    return %c0_i32, %arg1 : i32, i32
  }
  func.func @transform_2(%arg0: i32, %arg1: i32) -> (i32, i32) {
    %c0_i32 = arith.constant 0 : i32
    return %arg0, %arg1 : i32, i32
  }
}

</mosaic_0001>

<bundles_post_ra>
// kernel: tpu_custom_call.1
= control target key start
LH: loop header
LB: loop body
LE: loop exit
PB: predicated region body
PF: predicated region fallthrough
CT: control target
= control target key end

     0   :  { %7 = vsyncpa [#allocation3], 0  ;;  %s191_s0 = inlined_call_operand.hbm [shape: f32[8,256], index: 0, kind: input, shape index: {}]   ;;  %s192_s1 = inlined_call_operand.hbm [shape: f32[4,256], index: 1, kind: input, shape index: {}]   ;;  %s193_s2 = inlined_call_operand.hbm [shape: f32[8,256], index: 2, kind: output, shape index: {}]  }
   0x1   :  { %8 = vsyncpa [#allocation6], 0 }
   0x2   :  { %9 = vsyncpa [#allocation4], 0  ;;  %s15_s11 = sshll.u32 %s191_s0, 4  ;;  %s164_s12 = smov [#allocation2]   ;;  %s16_s11 = int_to_ptr.hbm [resolvable:$true] %s15_s11 }
   0x3   :  { %s17_s13 = sshll.u32 %s164_s12, 4  ;;  %s26_s16 = sshll.u32 %s192_s1, 4  ;;  %s18_s13 = int_to_ptr.vmem [resolvable:$true] %s17_s13  ;;  %s27_s16 = int_to_ptr.hbm [resolvable:$true] %s26_s16 }
   0x4   :  { %20 = dma.hbm_to_vmem [thread:$0]  %s16_s11, 256, %s18_s13, [#allocation3]  }
   0x5   :  { %s165_s17 = smov [#allocation5]  }
   0x6   :  { %s28_s18 = sshll.u32 %s165_s17, 4  ;;  %s29_s18 = int_to_ptr.vmem [resolvable:$true] %s28_s18 }
   0x7   :  { %31 = dma.hbm_to_vmem [thread:$0]  %s27_s16, 128, %s29_s18, [#allocation6]  }
   0x8   :  { %158 = dma.done.wait [#allocation3], 256  }
   0x9   :  { %159 = vsyncadd [#allocation3], 4294967040 }
   0xa   :  { %160 = dma.done.wait [#allocation6], 128  }
   0xb   :  { %161 = vsyncadd [#allocation6], 4294967168  ;;  %v40_v0 = vld [vmem:[#allocation5] sm:$0xff]  ;;  %v41_v1 = vld [vmem:[#allocation2] sm:$0xf]  ;;  %s166_s0 = smov [#allocation7]  }
   0xc   :  { %44 = vst [vmem:[#allocation1] ss:$2 sm:$0xff] %v40_v0  ;;  %v42_v2 = vld [vmem:[#allocation2 + $0x8] sm:$0xf]  ;;  %v53_v7 = vld [vmem:[#allocation2] sm:$0xf0] }
   0xd   :  { %v54_v8 = vld [vmem:[#allocation2 + $0x8] sm:$0xf0]  ;;  %s70_s1 = sshll.u32 %s166_s0, 4  ;;  %s72_s21 = sshll.u32 %s193_s2, 4  ;;  %s71_s1 = int_to_ptr.vmem [resolvable:$true] %s70_s1  ;;  %s73_s21 = int_to_ptr.hbm [resolvable:$true] %s72_s21 }
  0x13   :  { %v45_v3 = vld.sshfl [vmem:[#allocation1] sm:$0xff pattern:$0x75316420]  ;;  %v46_v4 = vld.sshfl [vmem:[#allocation1 + $0x8] sm:$0xff pattern:$0x75316420] }
  0x14   :  { %56 = vst [vmem:[#allocation1 + $0x1] ss:$2 sm:$0xff] %v40_v0  ;;  %v49_v5 = vadd.f32 %v45_v3, %v41_v1  ;;  %v50_v6 = vadd.f32 %v46_v4, %v42_v2 }
  0x16   :  { %51 = vst [vmem:[#allocation7] sm:$0xf] %v49_v5 }
  0x17   :  { %52 = vst [vmem:[#allocation7 + $0x8] sm:$0xf] %v50_v6 }
  0x1b   :  { %v57_v9 = vld.sshfl [vmem:[#allocation1] sm:$0xff pattern:$0x75316420]  ;;  %v58_v10 = vld.sshfl [vmem:[#allocation1 + $0x8] sm:$0xff pattern:$0x75316420] }
  0x1c   :  { %v61_v11 = vadd.f32 %v57_v9, %v53_v7  ;;  %v62_v12 = vadd.f32 %v58_v10, %v54_v8 }
  0x1e   :  { %63 = vst [vmem:[#allocation7] sm:$0xf0] %v61_v11 }
  0x1f   :  { %64 = vst [vmem:[#allocation7 + $0x8] sm:$0xf0] %v62_v12 }
  0x20   :  { %75 = dma.vmem_to_hbm [thread:$0]  %s71_s1, 256, %s73_s21, [#allocation4]  }
  0x21   :  { %162 = dma.done.wait [#allocation4], 256  }
  0x22   :  { %163 = vsyncadd [#allocation4], 4294967040 }
  0x23   :  { %80 = vsyncpa [#allocation3], 1 }
  0x24   :  { %81 = vsyncpa [#allocation6], 1 }
  0x25   :  { %82 = vsyncpa [#allocation4], 1 }

</bundles_post_ra>
